<compile_context>
chip_gen: v7x
topology: tpu7x:2x2x1
jax: 0.10.0
libtpu: 0.0.40
codegen_flags: <defaults>
</compile_context>

<pallas_src>
import jax
import jax.numpy as jnp
from jax import lax
from jax.experimental import pallas as pl
from jax.experimental.pallas import tpu as pltpu


def _recon_loss_kernel(targets_ref, cell_ref, w_ref, loss_ref, cnt_ref):
    """One row tile: scores = cell_tile @ W ; masked cross-entropy partials."""
    cell = cell_ref[...]          # (TILE_N, S)  bf16
    w = w_ref[...]                # (S, V)       bf16  (resident across grid)
    targets = targets_ref[...]    # (TILE_N, 1)  int32, -1 means "not in vocab"

    # Single MXU pass, f32 accumulation.
    scores = jnp.dot(cell, w, preferred_element_type=jnp.float32)     # (TILE_N, V)

    n, v = scores.shape
    # Numerically-stable log-softmax cross-entropy (all f32 on VPU/EUP/XLU).
    m = jnp.max(scores, axis=-1, keepdims=True)                       # (TILE_N, 1)
    lse = jnp.log(jnp.sum(jnp.exp(scores - m), axis=-1, keepdims=True)) + m

    # Gather target logit via one-hot compare (VPU-friendly, avoids gather).
    col = lax.broadcasted_iota(jnp.int32, (n, v), 1)
    tgt_score = jnp.sum(jnp.where(col == targets, scores, 0.0), axis=-1,
                        keepdims=True)

    per_row_nll = lse - tgt_score                                      # (TILE_N, 1)
    mask = targets >= 0
    loss_sum = jnp.sum(jnp.where(mask, per_row_nll, 0.0))
    count = jnp.sum(mask.astype(jnp.float32))

    # Lane-dense (8, 128) per-tile partial outputs (reduced in JAX afterwards).
    loss_ref[...] = jnp.full(loss_ref.shape, loss_sum, dtype=jnp.float32)
    cnt_ref[...] = jnp.full(cnt_ref.shape, count, dtype=jnp.float32)


def reconstruct_fixed_vocab_loss(sentences, outside_h, embedding_table, mat,
                                 vocab_tokens, weight=1.0, tile_n=128):
    """JAX wrapper reproducing ReconstructFixedVocab.forward -> scalar loss.

    With a fixed vocab, the W precompute / inverse-vocab table are one-time
    work; hoist this whole function under jax.jit on the training step.
    """
    B, L = sentences.shape
    size = outside_h.shape[-1]
    N = B * L
    cell = outside_h[:, :L].reshape(N, size)

    vocab_tokens = jnp.asarray(vocab_tokens, dtype=jnp.int32)          # (V,)
    V = int(vocab_tokens.shape[0])

    # W = mat @ embeddings(vocab).T : (S, V) — computed once outside the kernel.
    emb = embedding_table[vocab_tokens].astype(jnp.float32)            # (V, E)
    w = jnp.dot(jnp.asarray(mat, jnp.float32), emb.T)                  # (S, V)

    # vocab_index: token id -> position in vocab list, else -1
    # (replaces the Python `vocab.index(x)` loop; if the vocab list contained
    #  duplicates this keeps the LAST occurrence, list.index keeps the first).
    inv = jnp.full((embedding_table.shape[0],), -1, dtype=jnp.int32)
    inv = inv.at[vocab_tokens].set(jnp.arange(V, dtype=jnp.int32))
    vocab_index = inv[sentences.reshape(-1)]                           # (N,)

    # Pad the row dimension to a multiple of tile_n; padded rows are masked out.
    G = pl.cdiv(N, tile_n)
    Np = G * tile_n
    pad = Np - N
    if pad:
        cell = jnp.pad(cell, ((0, pad), (0, 0)))
        vocab_index = jnp.pad(vocab_index, (0, pad), constant_values=-1)
    targets = vocab_index.reshape(Np, 1)

    # bf16 operands for the MXU (halves DMA/VMEM for the big cell operand);
    # accumulation and softmax math stay f32 inside the kernel.
    cell_bf = cell.astype(jnp.bfloat16)
    w_bf = w.astype(jnp.bfloat16)
    S = cell_bf.shape[1]

    loss_parts, cnt_parts = pl.pallas_call(
        _recon_loss_kernel,
        out_shape=(jax.ShapeDtypeStruct((8 * G, 128), jnp.float32),
                   jax.ShapeDtypeStruct((8 * G, 128), jnp.float32)),
        grid=(G,),
        in_specs=[
            pl.BlockSpec((tile_n, 1), lambda i: (i, 0)),   # targets (row tile)
            pl.BlockSpec((tile_n, S), lambda i: (i, 0)),   # cell (row tile)
            pl.BlockSpec((S, V), lambda i: (0, 0)),        # W, resident all grid
        ],
        out_specs=(pl.BlockSpec((8, 128), lambda i: (i, 0)),
                   pl.BlockSpec((8, 128), lambda i: (i, 0))),
        compiler_params=pltpu.CompilerParams(
            dimension_semantics=("parallel",),             # shard tiles over TCs (v7x)
            vmem_limit_bytes=32 * 1024 * 1024),
    )(targets, cell_bf, w_bf)

    loss_sum = jnp.sum(loss_parts[::8, 0])
    count = jnp.sum(cnt_parts[::8, 0])
    # Original module asserts mask.any(); guard the divide so an all-masked
    # batch yields 0 instead of NaN.
    loss = loss_sum / jnp.maximum(count, 1.0)
    return loss * weight


def _reference_loss(sentences, outside_h, embedding_table, mat, vocab_tokens, weight):
    """Pure-JAX (f32) reference for verification."""
    B, L = sentences.shape
    size = outside_h.shape[-1]
    cell = outside_h[:, :L].reshape(B * L, size).astype(jnp.float32)
    emb = embedding_table[jnp.asarray(vocab_tokens)]
    scores = cell @ mat @ emb.T
    inv = jnp.full((embedding_table.shape[0],), -1, dtype=jnp.int32)
    inv = inv.at[jnp.asarray(vocab_tokens)].set(
        jnp.arange(len(vocab_tokens), dtype=jnp.int32))
    tgt = inv[sentences.reshape(-1)]
    mask = tgt >= 0
    logp = jax.nn.log_softmax(scores, axis=-1)
    nll = -jnp.take_along_axis(logp, jnp.where(mask, tgt, 0)[:, None], axis=1)[:, 0]
    return jnp.sum(jnp.where(mask, nll, 0.0)) / jnp.sum(mask) * weight


if __name__ == "__main__":
    key = jax.random.PRNGKey(0)
    k_emb, k_mat, k_cell, k_sent = jax.random.split(key, 4)

    # Small, module-consistent shapes.
    num_embeddings = 256   # full word2idx vocab
    input_size = 32        # embedding dim (E)
    size = 32              # diora hidden size (S)
    B, L = 2, 8            # batch, sentence length
    V = 128                # fixed reconstruction vocab size (ptb_top_10k subset)
    weight = 1.0

    # Deterministic parameter init (nn.Embedding / mat.normal_() analogue).
    embedding_table = jax.random.normal(k_emb, (num_embeddings, input_size),
                                        dtype=jnp.float32)
    mat = jax.random.normal(k_mat, (size, input_size), dtype=jnp.float32)

    # Synthetic fixed vocab: every other token id (128 tokens).
    # TODO(synk): file-based vocab loading (ptb_top_10k.txt) replaced by a
    # deterministic in-script vocab list.
    vocab_tokens = jnp.arange(0, num_embeddings, 2, dtype=jnp.int32)  # (V,)

    # Inputs: sentences (token ids) and diora.outside_h.
    sentences = jax.random.randint(k_sent, (B, L), 0, num_embeddings,
                                   dtype=jnp.int32)
    sentences = sentences.at[0, 0].set(vocab_tokens[0])  # guarantee mask.any()
    outside_h = jax.random.normal(k_cell, (B, L, size), dtype=jnp.float32)

    loss_fn = jax.jit(reconstruct_fixed_vocab_loss,
                      static_argnames=("weight", "tile_n"))
    loss = loss_fn(sentences, outside_h, embedding_table, mat, vocab_tokens,
                   weight=weight)
    loss = jax.block_until_ready(loss)

    ref = jax.block_until_ready(
        _reference_loss(sentences, outside_h, embedding_table, mat,
                        vocab_tokens, weight))
    assert jnp.isfinite(loss), loss
    # bf16 MXU operands (f32 accumulation) vs f32 reference -> relaxed tolerance.
    assert jnp.allclose(loss, ref, rtol=5e-2, atol=5e-2), (loss, ref)
    print("KERNEL_OK")
</pallas_src>

<mosaic_0001>
module attributes {stable_mosaic.version = 11 : i64} {
  func.func @_recon_loss_kernel(%arg0: i32, %arg1: memref<128x1xi32, #tpu.memory_space<vmem>>, %arg2: memref<128x32xbf16, #tpu.memory_space<vmem>>, %arg3: memref<32x128xbf16, #tpu.memory_space<vmem>>, %arg4: memref<8x128xf32, #tpu.memory_space<vmem>>, %arg5: memref<8x128xf32, #tpu.memory_space<vmem>>) attributes {dimension_semantics = [#tpu.dimension_semantics<parallel>], iteration_bounds = array<i64: 1>, scalar_prefetch = 0 : i64, scratch_operands = 0 : i64, tpu.core_type = #tpu.core_type<tc>, window_params = [{transform_indices = @transform_0, window_bounds = array<i64: 128, 1>}, {transform_indices = @transform_1, window_bounds = array<i64: 128, 32>}, {pipeline_mode = #tpu.pipeline_mode<synchronous>, transform_indices = @transform_2, window_bounds = array<i64: 32, 128>}, {transform_indices = @transform_3, window_bounds = array<i64: 8, 128>}, {transform_indices = @transform_4, window_bounds = array<i64: 8, 128>}]} {
    %c0 = arith.constant 0 : index
    %c0_0 = arith.constant 0 : index
    %0 = vector.load %arg2[%c0, %c0_0] : memref<128x32xbf16, #tpu.memory_space<vmem>>, vector<128x32xbf16>
    %c0_1 = arith.constant 0 : index
    %c0_2 = arith.constant 0 : index
    %1 = vector.load %arg3[%c0_1, %c0_2] : memref<32x128xbf16, #tpu.memory_space<vmem>>, vector<32x128xbf16>
    %c0_3 = arith.constant 0 : index
    %c0_4 = arith.constant 0 : index
    %2 = vector.load %arg1[%c0_3, %c0_4] : memref<128x1xi32, #tpu.memory_space<vmem>>, vector<128x1xi32>
    %cst = arith.constant dense<0.000000e+00> : vector<128x128xf32>
    %3 = tpu.matmul %0, %1, %cst {dimension_numbers = #tpu.dot_dimension_numbers<[1], [0], [0], [1], [0, 0, 1, 1], [], []>} : vector<128x32xbf16>, vector<32x128xbf16>, vector<128x128xf32> -> vector<128x128xf32>
    %cst_5 = arith.constant dense<0xFF800000> : vector<128xf32>
    %4 = vector.multi_reduction <maximumf>, %3, %cst_5 [1] : vector<128x128xf32> to vector<128xf32>
    %5 = vector.shape_cast %4 : vector<128xf32> to vector<128x1xf32>
    %6 = vector.broadcast %5 : vector<128x1xf32> to vector<128x128xf32>
    %7 = arith.subf %3, %6 : vector<128x128xf32>
    %8 = math.exp %7 : vector<128x128xf32>
    %cst_6 = arith.constant dense<0.000000e+00> : vector<128xf32>
    %9 = vector.multi_reduction <add>, %8, %cst_6 [1] : vector<128x128xf32> to vector<128xf32>
    %10 = vector.shape_cast %9 : vector<128xf32> to vector<128x1xf32>
    %11 = math.log %10 : vector<128x1xf32>
    %12 = arith.addf %11, %5 : vector<128x1xf32>
    %13 = tpu.iota {dimensions = array<i32: 1>} : vector<128x128xi32>
    %14 = vector.broadcast %2 : vector<128x1xi32> to vector<128x128xi32>
    %15 = arith.cmpi eq, %13, %14 : vector<128x128xi32>
    %cst_7 = arith.constant 0.000000e+00 : f32
    %16 = vector.broadcast %cst_7 : f32 to vector<128x128xf32>
    %17 = arith.select %15, %3, %16 : vector<128x128xi1>, vector<128x128xf32>
    %cst_8 = arith.constant dense<0.000000e+00> : vector<128xf32>
    %18 = vector.multi_reduction <add>, %17, %cst_8 [1] : vector<128x128xf32> to vector<128xf32>
    %19 = vector.shape_cast %18 : vector<128xf32> to vector<128x1xf32>
    %20 = arith.subf %12, %19 : vector<128x1xf32>
    %c0_i32 = arith.constant 0 : i32
    %21 = vector.broadcast %c0_i32 : i32 to vector<128x1xi32>
    %22 = arith.cmpi sge, %2, %21 : vector<128x1xi32>
    %cst_9 = arith.constant 0.000000e+00 : f32
    %23 = vector.broadcast %cst_9 : f32 to vector<128x1xf32>
    %24 = arith.select %22, %20, %23 : vector<128x1xi1>, vector<128x1xf32>
    %25 = vector.shape_cast %24 : vector<128x1xf32> to vector<1x128x1xf32>
    %cst_10 = arith.constant dense<0.000000e+00> : vector<1xf32>
    %26 = vector.multi_reduction <add>, %25, %cst_10 [1, 2] : vector<1x128x1xf32> to vector<1xf32>
    %27 = vector.shape_cast %26 : vector<1xf32> to vector<1x1x1xf32>
    %28 = vector.extract %27[0, 0, 0] : f32 from vector<1x1x1xf32>
    %29 = arith.extui %22 : vector<128x1xi1> to vector<128x1xi32>
    %30 = arith.sitofp %29 : vector<128x1xi32> to vector<128x1xf32>
    %31 = vector.shape_cast %30 : vector<128x1xf32> to vector<1x128x1xf32>
    %cst_11 = arith.constant dense<0.000000e+00> : vector<1xf32>
    %32 = vector.multi_reduction <add>, %31, %cst_11 [1, 2] : vector<1x128x1xf32> to vector<1xf32>
    %33 = vector.shape_cast %32 : vector<1xf32> to vector<1x1x1xf32>
    %34 = vector.extract %33[0, 0, 0] : f32 from vector<1x1x1xf32>
    %35 = vector.broadcast %28 : f32 to vector<8x128xf32>
    %c0_12 = arith.constant 0 : index
    %c0_13 = arith.constant 0 : index
    %36 = vector.load %arg4[%c0_12, %c0_13] : memref<8x128xf32, #tpu.memory_space<vmem>>, vector<8x128xf32>
    tpu.vector_store %arg4[%c0_12, %c0_13], %35 {strides = array<i32>} : memref<8x128xf32, #tpu.memory_space<vmem>>, vector<8x128xf32>,
    %37 = vector.broadcast %34 : f32 to vector<8x128xf32>
    %c0_14 = arith.constant 0 : index
    %c0_15 = arith.constant 0 : index
    %38 = vector.load %arg5[%c0_14, %c0_15] : memref<8x128xf32, #tpu.memory_space<vmem>>, vector<8x128xf32>
    tpu.vector_store %arg5[%c0_14, %c0_15], %37 {strides = array<i32>} : memref<8x128xf32, #tpu.memory_space<vmem>>, vector<8x128xf32>,
    return
  }
  func.func @transform_0(%arg0: i32) -> (i32, i32) {
    %c0_i32 = arith.constant 0 : i32
    %c0_i32_0 = arith.constant 0 : i32
    return %arg0, %c0_i32 : i32, i32
  }
  func.func @transform_1(%arg0: i32) -> (i32, i32) {
    %c0_i32 = arith.constant 0 : i32
    %c0_i32_0 = arith.constant 0 : i32
    return %arg0, %c0_i32 : i32, i32
  }
  func.func @transform_2(%arg0: i32) -> (i32, i32) {
    %c0_i32 = arith.constant 0 : i32
    %c0_i32_0 = arith.constant 0 : i32
    %c0_i32_1 = arith.constant 0 : i32
    return %c0_i32, %c0_i32_0 : i32, i32
  }
  func.func @transform_3(%arg0: i32) -> (i32, i32) {
    %c0_i32 = arith.constant 0 : i32
    %c0_i32_0 = arith.constant 0 : i32
    return %arg0, %c0_i32 : i32, i32
  }
  func.func @transform_4(%arg0: i32) -> (i32, i32) {
    %c0_i32 = arith.constant 0 : i32
    %c0_i32_0 = arith.constant 0 : i32
    return %arg0, %c0_i32 : i32, i32
  }
}

</mosaic_0001>

<bundles_post_ra>
// kernel: reconstruct_fixed_vocab_loss.1
= control target key start
LH: loop header
LB: loop body
LE: loop exit
PB: predicated region body
PF: predicated region fallthrough
CT: control target
= control target key end

     0   :  { %v824_v1 = vmov 0   ;;  %vm105_vm0 = vcmask 261120   ;;  %v387_v30 = vlaneseq  ;;  %vm549_vm15 = vcmask 7168   ;;  %s1317_s2 = inlined_call_operand.vmem [shape: bf16[32,128], index: 2, kind: input, shape index: {}]   ;;  %s1318_s1 = inlined_call_operand.vmem [shape: bf16[128,32], index: 1, kind: input, shape index: {}]   ;;  %s1319_s0 = inlined_call_operand.vmem [shape: s32[128,1], index: 0, kind: input, shape index: {}]   ;;  %s1320_s3 = inlined_call_operand.vmem [shape: f32[8,128], index: 3, kind: output, shape index: {0}]   ;;  %s1321_s4 = inlined_call_operand.vmem [shape: f32[8,128], index: 4, kind: output, shape index: {1}]  }
   0x1   :  { %v750_v0 = vld [vmem:[%s1317_s2] sm:$0xff]   ;;  %749 = vset.pattern.permute.xlu1 %v824_v1  ;;  %748 = vset.pattern.permute.xlu0 %v824_v1  ;;  %v751_v2 = vld [vmem:[%s1317_s2 + $0x8] sm:$0xff]   ;;  %v756_v7 = vld [vmem:[%s1318_s1 + $0x10] sm:$0xff]  }
   0x2   :  { %718 = vmatprep.subr.bf16.mxu0 %v750_v0  ;;  %738 = vmatprep.subr.bf16.mxu1 %v750_v0  ;;  %v752_v3 = vld [vmem:[%s1318_s1] sm:$0xff]   ;;  %v754_v5 = vld [vmem:[%s1318_s1 + $0x8] sm:$0xff]   ;;  %v758_v8 = vld [vmem:[%s1318_s1 + $0x30] sm:$0xff]   ;;  %v967_v32 = vand.u32 127, %v387_v30 }
   0x3   :  { %719 = vmatpush3.bf16.msra.mxu0 %v750_v0  ;;  %740 = vmatpush3.bf16.msra.mxu1 %v750_v0  ;;  %v753_v4 = vld [vmem:[%s1318_s1 + $0x20] sm:$0xff]   ;;  %v755_v6 = vld [vmem:[%s1318_s1 + $0x28] sm:$0xff]   ;;  %v895_v11 = vld [vmem:[%s1319_s0 + $0x10] sm:$0xff] }
   0x4   :  { %720 = vmatprep.subr.bf16.mxu0 %v751_v2  ;;  %739 = vmatprep.subr.bf16.mxu1 %v751_v2  ;;  %v882_v9 = vld [vmem:[%s1319_s0 + $0x8] sm:$0xff]  ;;  %v890_v10 = vld [vmem:[%s1319_s0] sm:$0xff]  ;;  %v757_v12 = vld [vmem:[%s1318_s1 + $0x18] sm:$0xff]  }
   0x5   :  { %722 = vmatprep.mubr.msk.bf16.mxu0 %vm105_vm0, %v752_v3  ;;  %730 = vmatprep.mubr.msk.bf16.mxu1 %vm105_vm0, %v753_v4  ;;  %v759_v13 = vld [vmem:[%s1318_s1 + $0x38] sm:$0xff]   ;;  %v907_v14 = vld [vmem:[%s1319_s0 + $0x48] sm:$0xff]  ;;  %v927_v17 = vld [vmem:[%s1319_s0 + $0x20] sm:$0xff]  ;;  %vm518_vm12 = vcmp.ge.s32.totalorder %v882_v9, 0  ;;  %vm517_vm13 = vcmp.ge.s32.totalorder %v890_v10, 0 }
   0x6   :  { %393 = vperm.xlu1 %749, %v882_v9   ;;  %390 = vperm.xlu0 %748, %v890_v10   ;;  %v913_v15 = vld [vmem:[%s1319_s0 + $0x18] sm:$0xff]  ;;  %v934_v18 = vld [vmem:[%s1319_s0 + $0x28] sm:$0xff]  ;;  %v940_v19 = vld [vmem:[%s1319_s0 + $0x30] sm:$0xff] }
   0x7   :  { %721 = vmatpush3.bf16.msra.mxu0 %v751_v2  ;;  %741 = vmatpush3.bf16.msra.mxu1 %v751_v2  ;;  %v921_v16 = vld [vmem:[%s1319_s0 + $0x58] sm:$0xff]  ;;  %v952_v21 = vld [vmem:[%s1319_s0 + $0x40] sm:$0xff]  ;;  %v958_v22 = vld [vmem:[%s1319_s0 + $0x50] sm:$0xff] }
   0x8   :  { %v946_v20 = vld [vmem:[%s1319_s0 + $0x38] sm:$0xff]  ;;  %v1047_v58 = vld [vmem:[%s1319_s0 + $0x60] sm:$0xff]  ;;  %v1053_v59 = vld [vmem:[%s1319_s0 + $0x68] sm:$0xff] }
   0x9   :  { %v1059_v60 = vld [vmem:[%s1319_s0 + $0x78] sm:$0xff]  ;;  %v1072_v63 = vld [vmem:[%s1319_s0 + $0x70] sm:$0xff] }
   0xa   :  { %723 = vmatmul.mubr.msk.bf16.vlgmr.msra.gmra.mrb[0].mxu0 %vm105_vm0, %v754_v5  ;;  %731 = vmatmul.mubr.msk.bf16.vlgmr.msra.gmra.mrb[0].mxu1 %vm105_vm0, %v755_v6 }
   0xb   :  { %726 = vmatprep.mubr.msk.bf16.mxu0 %vm105_vm0, %v756_v7  ;;  %734 = vmatprep.mubr.msk.bf16.mxu1 %vm105_vm0, %v758_v8 }
   0xc   :  { %396 = vperm.xlu1 %749, %v895_v11   ;;  %417 = vperm.xlu0 %748, %v907_v14  }
  0x10   :  { %399 = vperm.xlu1 %749, %v913_v15   ;;  %423 = vperm.xlu0 %748, %v921_v16  }
  0x12   :  { %727 = vmatmul.mubr.msk.bf16.gmra.mrb[4].mxu0 %vm105_vm0, %v757_v12  ;;  %735 = vmatmul.mubr.msk.bf16.gmra.mrb[4].mxu1 %vm105_vm0, %v759_v13  ;;  %vm519_vm0 = vcmp.ge.s32.totalorder %v895_v11, 0 }
  0x14   :  { %402 = vperm.xlu1 %749, %v927_v17  }
  0x18   :  { %405 = vperm.xlu1 %749, %v934_v18  }
  0x1c   :  { %408 = vperm.xlu1 %749, %v940_v19  }
  0x20   :  { %411 = vperm.xlu1 %749, %v946_v20  }
  0x24   :  { %414 = vperm.xlu1 %749, %v952_v21  }
  0x28   :  { %420 = vperm.xlu1 %749, %v958_v22  }
  0x85   :  { %v961_v23 = vpop.permute.xlu1 %393  ;;  %v965_v31 = vpop.permute.xlu0 %390 }
  0x86   :  { %vm438_vm8 = vcmp.eq.s32.totalorder %v967_v32, %v961_v23  ;;  %vm437_vm10 = vcmp.eq.s32.totalorder %v967_v32, %v965_v31 }
  0x8b   :  { %v963_v24 = vpop.permute.xlu1 %396  ;;  %v418_v34 = vpop.permute.xlu0 %417 }
  0x8c   :  { %vm446_vm3 = vcmp.eq.s32.totalorder %v967_v32, %v418_v34  ;;  %vm439_vm9 = vcmp.eq.s32.totalorder %v967_v32, %v963_v24 }
  0x8f   :  { %v400_v25 = vpop.permute.xlu1 %399  ;;  %v1080_v2 = vpop.permute.xlu0 %423 }
  0x90   :  { %vm440_vm2 = vcmp.eq.s32.totalorder %v967_v32, %v400_v25 }
  0x93   :  { %v403_v26 = vpop.permute.xlu1 %402 }
  0x94   :  { %vm441_vm5 = vcmp.eq.s32.totalorder %v967_v32, %v403_v26 }
  0x97   :  { %v406_v27 = vpop.permute.xlu1 %405 }
  0x98   :  { %vm442_vm7 = vcmp.eq.s32.totalorder %v967_v32, %v406_v27 }
  0x9b   :  { %v409_v28 = vpop.permute.xlu1 %408 }
  0x9c   :  { %vm443_vm4 = vcmp.eq.s32.totalorder %v967_v32, %v409_v28 }
  0x9f   :  { %v412_v29 = vpop.permute.xlu1 %411 }
  0xa0   :  { %vm444_vm6 = vcmp.eq.s32.totalorder %v967_v32, %v412_v29 }
  0xa3   :  { %v415_v33 = vpop.permute.xlu1 %414 }
  0xa4   :  { %vm445_vm1 = vcmp.eq.s32.totalorder %v967_v32, %v415_v33 }
  0xa7   :  { %v1078_v1 = vpop.permute.xlu1 %420 }
  0xa8   :  { %vm447_vm11 = vcmp.eq.s32.totalorder %v967_v32, %v1078_v1 }
  0xdd   :  { %v971_v35 = vpop.f32.mrb[0].mxu0  ;;  %v973_v36 = vpop.f32.mrb[0].mxu1 }
  0xde   :  { %v975_v37 = vpop.f32.mrb[1].mxu0  ;;  %231 = vmax.xlane.f32.xlu1 %v971_v35  ;;  %247 = vmax.xlane.f32.xlu0 %v973_v36  ;;  %v980_v38 = vpop.f32.mrb[1].mxu1  ;;  %v455_v62 = vsel %vm439_vm9, %v971_v35, 0.0  ;;  %vm448_vm9 = vcmp.eq.s32.totalorder %v967_v32, %v1080_v2 }
  0xdf   :  { %v982_v39 = vpop.f32.mrb[2].mxu0  ;;  %v984_v40 = vpop.f32.mrb[2].mxu1  ;;  %v987_v41 = vsel %vm445_vm1, %v980_v38, 0.0  ;;  %v453_v0 = vsel %vm437_vm10, %v975_v37, 0.0  ;;  %vm520_vm1 = vcmp.ge.s32.totalorder %v913_v15, 0  ;;  %vm527_vm10 = vcmp.ge.s32.totalorder %v958_v22, 0 }
  0xe0   :  { %v989_v42 = vpop.f32.mrb[3].mxu0  ;;  %v991_v43 = vpop.f32.mrb[3].mxu1  ;;  %v994_v44 = vsel %vm440_vm2, %v982_v39, 0.0  ;;  %vm521_vm2 = vcmp.ge.s32.totalorder %v927_v17, 0 }
  0xe1   :  { %v997_v45 = vsel %vm446_vm3, %v991_v43, 0.0  ;;  %v454_v61 = vsel %vm438_vm8, %v989_v42, 0.0  ;;  %vm526_vm8 = vcmp.ge.s32.totalorder %v907_v14, 0 }
  0xe2   :  { %233 = vmax.xlane.f32.xlu1 %v982_v39  ;;  %227 = vmax.xlane.f32.xlu0 %v975_v37 }
  0xe5   :  { %v1004_v46 = vpop.f32.mrb[4].mxu0  ;;  %v1006_v47 = vpop.f32.mrb[4].mxu1 }
  0xe6   :  { %249 = vmax.xlane.f32.xlu1 %v984_v40  ;;  %243 = vmax.xlane.f32.xlu0 %v980_v38  ;;  %v1011_v48 = vpop.f32.mrb[5].mxu0  ;;  %v1013_v49 = vpop.f32.mrb[5].mxu1  ;;  %v1016_v50 = vsel %vm443_vm4, %v1004_v46, 0.0  ;;  %vm522_vm4 = vcmp.ge.s32.totalorder %v934_v18, 0 }
  0xe7   :  { %v1018_v51 = vpop.f32.mrb[6].mxu0  ;;  %v1020_v52 = vpop.f32.mrb[6].mxu1  ;;  %v1023_v53 = vsel %vm441_vm5, %v1011_v48, 0.0  ;;  %vm523_vm5 = vcmp.ge.s32.totalorder %v940_v19, 0 }
  0xe8   :  { %v1025_v54 = vpop.f32.mrb[7].mxu0  ;;  %v1027_v55 = vpop.f32.mrb[7].mxu1  ;;  %v1030_v56 = vsel %vm444_vm6, %v1018_v51, 0.0  ;;  %vm524_vm6 = vcmp.ge.s32.totalorder %v946_v20, 0 }
  0xe9   :  { %v1033_v57 = vsel %vm442_vm7, %v1025_v54, 0.0  ;;  %vm525_vm7 = vcmp.ge.s32.totalorder %v952_v21, 0 }
  0xea   :  { %245 = vmax.xlane.f32.xlu1 %v991_v43  ;;  %229 = vmax.xlane.f32.xlu0 %v989_v42 }
  0xee   :  { %241 = vmax.xlane.f32.xlu1 %v1018_v51  ;;  %239 = vmax.xlane.f32.xlu0 %v1004_v46 }
  0xf2   :  { %257 = vmax.xlane.f32.xlu1 %v1020_v52  ;;  %255 = vmax.xlane.f32.xlu0 %v1006_v47 }
  0xf6   :  { %237 = vmax.xlane.f32.xlu1 %v1025_v54  ;;  %235 = vmax.xlane.f32.xlu0 %v1011_v48 }
  0xfa   :  { %251 = vmax.xlane.f32.xlu0 %v1013_v49 }
 0x107   :  { %426 = vperm.xlu1 %749, %v1047_v58  }
 0x110   :  { %429 = vperm.xlu0 %748, %v1053_v59  }
 0x114   :  { %435 = vperm.xlu0 %748, %v1059_v60  }
 0x12b   :  { %253 = vmax.xlane.f32.xlu1 %v1027_v55 }
 0x133   :  { %471 = vadd.xlane.f32.xlu0 %v454_v61 }
 0x137   :  { %473 = vadd.xlane.f32.xlu0 %v455_v62 }
 0x13c   :  { %432 = vperm.xlu1 %749, %v1072_v63  }
 0x160   :  { %469 = vadd.xlane.f32.xlu1 %v453_v0 }
 0x16b   :  { %v1082_v3 = vpop.xlane.xlu1 %231  ;;  %v1084_v4 = vpop.xlane.xlu0 %247 }
 0x16c   :  { %v261_v5 = vsub.f32 %v971_v35, %v1082_v3  ;;  %v269_v6 = vsub.f32 %v973_v36, %v1084_v4 }
 0x16e   :  { %v279_v7 = vmul.f32 1.442695, %v261_v5  ;;  %v295_v8 = vmul.f32 1.442695, %v269_v6 }
 0x16f   :  { %v1090_v12 = vpop.xlane.xlu1 %233  ;;  %v1092_v13 = vpop.xlane.xlu0 %227 }
 0x170   :  { %760 = vpow2.f32 %v279_v7  ;;  %v262_v23 = vsub.f32 %v982_v39, %v1090_v12  ;;  %v259_v24 = vsub.f32 %v975_v37, %v1092_v13 }
 0x171   :  { %762 = vpow2.f32 %v295_v8 }
 0x172   :  { %v275_v25 = vmul.f32 1.442695, %v259_v24  ;;  %v281_v28 = vmul.f32 1.442695, %v262_v23 }
 0x173   :  { %v1098_v26 = vpop.xlane.xlu1 %249  ;;  %v1100_v27 = vpop.xlane.xlu0 %243 }
 0x174   :  { %v267_v29 = vsub.f32 %v980_v38, %v1100_v27  ;;  %764 = vpow2.f32 %v275_v25 }
 0x175   :  { %766 = vpow2.f32 %v281_v28 }
 0x176   :  { %v291_v30 = vmul.f32 1.442695, %v267_v29 }
 0x177   :  { %v1104_v31 = vpop.xlane.xlu1 %245  ;;  %v1106_v33 = vpop.xlane.xlu0 %229 }
 0x178   :  { %v268_v34 = vsub.f32 %v991_v43, %v1104_v31  ;;  %v260_v35 = vsub.f32 %v989_v42, %v1106_v33  ;;  %768 = vpow2.f32 %v291_v30 }
 0x17a   :  { %v761_v37 = vpop.eup %760  ;;  %v293_v39 = vmul.f32 1.442695, %v268_v34  ;;  %v277_v61 = vmul.f32 1.442695, %v260_v35 }
 0x17b   :  { %v763_v62 = vpop.eup %762  ;;  %v1112_v0 = vpop.xlane.xlu1 %241  ;;  %311 = vadd.xlane.f32.xlu0 %v761_v37 }
 0x17c   :  { %v1114_v38 = vpop.xlane.xlu0 %239  ;;  %770 = vpow2.f32 %v293_v39  ;;  %v266_v5 = vsub.f32 %v1018_v51, %v1112_v0  ;;  %327 = vadd.xlane.f32.xlu1 %v763_v62 }
 0x17d   :  { %v265_v43 = vsub.f32 %v1004_v46, %v1114_v38  ;;  %772 = vpow2.f32 %v277_v61  ;;  %v270_v46 = vsub.f32 %v984_v40, %v1098_v26 }
 0x17e   :  { %v289_v42 = vmul.f32 1.442695, %v266_v5  ;;  %v765_v7 = vpop.eup %764 }
 0x17f   :  { %v287_v6 = vmul.f32 1.442695, %v265_v43  ;;  %v1120_v8 = vpop.xlane.xlu1 %257  ;;  %v767_v24 = vpop.eup %766  ;;  %v297_v62 = vmul.f32 1.442695, %v270_v46 }
 0x180   :  { %v1122_v23 = vpop.xlane.xlu0 %255  ;;  %774 = vpow2.f32 %v289_v42  ;;  %307 = vadd.xlane.f32.xlu1 %v765_v7 }
 0x181   :  { %776 = vpow2.f32 %v287_v6 }
 0x182   :  { %v769_v25 = vpop.eup %768 }
 0x183   :  { %v1124_v28 = vpop.xlane.xlu1 %237  ;;  %323 = vadd.xlane.f32.xlu0 %v769_v25 }
 0x184   :  { %v1126_v51 = vpop.xlane.xlu0 %235  ;;  %v264_v29 = vsub.f32 %v1025_v54, %v1124_v28  ;;  %313 = vadd.xlane.f32.xlu1 %v767_v24 }
 0x185   :  { %v263_v30 = vsub.f32 %v1011_v48, %v1126_v51  ;;  %v273_v48 = vsub.f32 %v1006_v47, %v1122_v23 }
 0x186   :  { %v771_v34 = vpop.eup %770  ;;  %v285_v35 = vmul.f32 1.442695, %v264_v29 }
 0x187   :  { %v283_v37 = vmul.f32 1.442695, %v263_v30  ;;  %v773_v39 = vpop.eup %772  ;;  %v303_v6 = vmul.f32 1.442695, %v273_v48  ;;  %v427_v30 = vpop.permute.xlu1 %426 }
 0x188   :  { %v1134_v61 = vpop.xlane.xlu0 %251  ;;  %778 = vpow2.f32 %v285_v35  ;;  %325 = vadd.xlane.f32.xlu1 %v771_v34  ;;  %309 = vadd.xlane.f32.xlu0 %v773_v39  ;;  %vm449_vm14 = vcmp.eq.s32.totalorder %v967_v32, %v427_v30 }
 0x189   :  { %v271_v5 = vsub.f32 %v1013_v49, %v1134_v61  ;;  %780 = vpow2.f32 %v283_v37 }
 0x18a   :  { %v775_v54 = vpop.eup %774  ;;  %782 = vpow2.f32 %v297_v62  ;;  %v274_v62 = vsub.f32 %v1020_v52, %v1120_v8 }
 0x18b   :  { %v777_v43 = vpop.eup %776  ;;  %v299_v42 = vmul.f32 1.442695, %v271_v5 }
 0x18c   :  { %321 = vadd.xlane.f32.xlu1 %v775_v54  ;;  %319 = vadd.xlane.f32.xlu0 %v777_v43 }
 0x18d   :  { %784 = vpow2.f32 %v299_v42 }
 0x18e   :  { %786 = vpow2.f32 %v303_v6  ;;  %v305_v6 = vmul.f32 1.442695, %v274_v62 }
 0x18f   :  { %v430_v62 = vpop.permute.xlu0 %429 }
 0x192   :  { %v779_v7 = vpop.eup %778 }
 0x193   :  { %v781_v24 = vpop.eup %780  ;;  %317 = vadd.xlane.f32.xlu1 %v779_v7 }
 0x194   :  { %315 = vadd.xlane.f32.xlu0 %v781_v24  ;;  %v783_v25 = vpop.eup %782 }
 0x197   :  { %329 = vadd.xlane.f32.xlu1 %v783_v25  ;;  %v785_v46 = vpop.eup %784 }
 0x198   :  { %475 = vadd.xlane.f32.xlu0 %v994_v44  ;;  %v787_v29 = vpop.eup %786  ;;  %v463_v44 = vsel %vm447_vm11, %v973_v36, 0.0  ;;  %v465_v36 = vsel %vm449_vm14, %v1013_v49, 0.0  ;;  %vm450_vm11 = vcmp.eq.s32.totalorder %v967_v32, %v430_v62  ;;  %vm1322_vm14 = vcmp.ge.s32.totalorder %v921_v16, 0 }
 0x19b   :  { %331 = vadd.xlane.f32.xlu1 %v785_v46 }
 0x19c   :  { %477 = vadd.xlane.f32.xlu0 %v1023_v53  ;;  %v825_v53 = vmov 0.0  }
 0x19d   :  { %v694_v1 = vsel %vm519_vm0, 1.0, %v825_v53  ;;  %v695_v37 = vsel %vm520_vm1, 1.0, %v825_v53  ;;  %v696_v48 = vsel %vm521_vm2, 1.0, %v825_v53  ;;  %v697_v46 = vsel %vm522_vm4, 1.0, %v825_v53 }
 0x19e   :  { %v625_v35 = vsel %vm549_vm15, %v694_v1, 0.0  ;;  %v627_v54 = vsel %vm549_vm15, %v695_v37, 0.0  ;;  %v629_v25 = vsel %vm549_vm15, %v696_v48, 0.0  ;;  %v631_v30 = vsel %vm549_vm15, %v697_v46, 0.0 }
 0x19f   :  { %335 = vadd.xlane.f32.xlu1 %v787_v29  ;;  %v702_v48 = vsel %vm527_vm10, 1.0, %v825_v53 }
 0x1a0   :  { %479 = vadd.xlane.f32.xlu0 %v1033_v57  ;;  %v693_v57 = vsel %vm518_vm12, 1.0, %v825_v53 }
 0x1a4   :  { %481 = vadd.xlane.f32.xlu0 %v1016_v50  ;;  %v692_v50 = vsel %vm517_vm13, 1.0, %v825_v53 }
 0x1a8   :  { %483 = vadd.xlane.f32.xlu0 %v1030_v56  ;;  %v622_v56 = vsel %vm549_vm15, %v692_v50, 0.0 }
 0x1ac   :  { %485 = vadd.xlane.f32.xlu0 %v987_v41  ;;  %v623_v41 = vsel %vm549_vm15, %v693_v57, 0.0 }
 0x1ad   :  { %v624_v34 = vadd.f32 %v623_v41, %v622_v56  ;;  %v699_v41 = vsel %vm524_vm6, 1.0, %v825_v53 }
 0x1ae   :  { %v635_v1 = vsel %vm549_vm15, %v699_v41, 0.0 }
 0x1af   :  { %v626_v5 = vadd.f32 %v625_v35, %v624_v34  ;;  %v700_v34 = vsel %vm525_vm7, 1.0, %v825_v53 }
 0x1b0   :  { %489 = vadd.xlane.f32.xlu0 %v463_v44  ;;  %v698_v44 = vsel %vm523_vm5, 1.0, %v825_v53  ;;  %v637_v37 = vsel %vm549_vm15, %v700_v34, 0.0 }
 0x1b1   :  { %v628_v7 = vadd.f32 %v627_v54, %v626_v5  ;;  %v633_v50 = vsel %vm549_vm15, %v698_v44, 0.0 }
 0x1b3   :  { %v630_v29 = vadd.f32 %v629_v25, %v628_v7  ;;  %v703_v7 = vsel %vm1322_vm14, 1.0, %v825_v53  ;;  %vm531_vm14 = vcmp.ge.s32.totalorder %v1072_v63, 0 }
 0x1b4   :  { %493 = vadd.xlane.f32.xlu0 %v465_v36 }
 0x1b8   :  { %v1170_v39 = vpop.xlane.xlu1 %253 }
 0x1b9   :  { %v272_v49 = vsub.f32 %v1027_v55, %v1170_v39 }
 0x1bb   :  { %v301_v43 = vmul.f32 1.442695, %v272_v49  ;;  %v701_v49 = vsel %vm526_vm8, 1.0, %v825_v53 }
 0x1bc   :  { %v433_v42 = vpop.permute.xlu1 %432  ;;  %v639_v54 = vsel %vm549_vm15, %v701_v49, 0.0 }
 0x1bd   :  { %788 = vpow2.f32 %v301_v43  ;;  %vm451_vm3 = vcmp.eq.s32.totalorder %v967_v32, %v433_v42  ;;  %v464_v43 = vsel %vm448_vm9, %v984_v40, 0.0  ;;  %v436_v42 = vpop.permute.xlu0 %435  ;;  %vm529_vm9 = vcmp.ge.s32.totalorder %v1047_v58, 0 }
 0x1be   :  { %v467_v24 = vsel %vm451_vm3, %v1006_v47, 0.0  ;;  %790 = vpow2.f32 %v305_v6  ;;  %v632_v47 = vadd.f32 %v631_v30, %v630_v29  ;;  %v466_v6 = vsel %vm450_vm11, %v1027_v55, 0.0 }
 0x1bf   :  { %497 = vadd.xlane.f32.xlu0 %v467_v24  ;;  %vm452_vm3 = vcmp.eq.s32.totalorder %v967_v32, %v436_v42  ;;  %v643_v24 = vsel %vm549_vm15, %v703_v7, 0.0  ;;  %v704_v46 = vsel %vm529_vm9, 1.0, %v825_v53  ;;  %vm530_vm11 = vcmp.ge.s32.totalorder %v1053_v59, 0 }
 0x1c0   :  { %v634_v56 = vadd.f32 %v633_v50, %v632_v47  ;;  %v468_v25 = vsel %vm452_vm3, %v1020_v52, 0.0  ;;  %v645_v29 = vsel %vm549_vm15, %v704_v46, 0.0  ;;  %v705_v32 = vsel %vm530_vm11, 1.0, %v825_v53 }
 0x1c1   :  { %v647_v44 = vsel %vm549_vm15, %v705_v32, 0.0  ;;  %v706_v52 = vsel %vm531_vm14, 1.0, %v825_v53  ;;  %vm532_vm3 = vcmp.ge.s32.totalorder %v1059_v60, 0 }
 0x1c2   :  { %v636_v35 = vadd.f32 %v635_v1, %v634_v56  ;;  %v707_v50 = vsel %vm532_vm3, 1.0, %v825_v53  ;;  %v472_v1 = vpop.xlane.xlu0 %471 }
 0x1c3   :  { %v651_v56 = vsel %vm549_vm15, %v707_v50, 0.0 }
 0x1c4   :  { %v638_v5 = vadd.f32 %v637_v37, %v636_v35 }
 0x1c6   :  { %v640_v2 = vadd.f32 %v639_v54, %v638_v5  ;;  %v474_v35 = vpop.xlane.xlu0 %473 }
 0x1c7   :  { %v789_v57 = vpop.eup %788 }
 0x1c8   :  { %333 = vadd.xlane.f32.xlu1 %v789_v57  ;;  %v791_v36 = vpop.eup %790  ;;  %v649_v57 = vsel %vm549_vm15, %v706_v52, 0.0 }
 0x1cc   :  { %337 = vadd.xlane.f32.xlu1 %v791_v36 }
 0x1d0   :  { %487 = vadd.xlane.f32.xlu1 %v997_v45  ;;  %v641_v45 = vsel %vm549_vm15, %v702_v48, 0.0 }
 0x1d1   :  { %v642_v40 = vadd.f32 %v641_v45, %v640_v2 }
 0x1d3   :  { %v644_v55 = vadd.f32 %v643_v24, %v642_v40 }
 0x1d4   :  { %491 = vadd.xlane.f32.xlu1 %v464_v43 }
 0x1d5   :  { %v646_v30 = vadd.f32 %v645_v29, %v644_v55 }
 0x1d7   :  { %v648_v47 = vadd.f32 %v647_v44, %v646_v30 }
 0x1d8   :  { %495 = vadd.xlane.f32.xlu1 %v466_v6 }
 0x1d9   :  { %v650_v41 = vadd.f32 %v649_v57, %v648_v47 }
 0x1db   :  { %v652_v36 = vadd.f32 %v651_v56, %v650_v41 }
 0x1dc   :  { %499 = vadd.xlane.f32.xlu1 %v468_v25 }
 0x1e0   :  { %653 = vadd.xlane.f32.xlu1 %v652_v36 }
 0x1ed   :  { %v470_v34 = vpop.xlane.xlu1 %469 }
 0x208   :  { %v312_v62 = vpop.xlane.xlu0 %311 }
 0x209   :  { %v328_v37 = vpop.xlane.xlu1 %327 }
 0x20d   :  { %v308_v5 = vpop.xlane.xlu1 %307 }
 0x210   :  { %v324_v49 = vpop.xlane.xlu0 %323 }
 0x211   :  { %v314_v43 = vpop.xlane.xlu1 %313 }
 0x215   :  { %v310_v54 = vpop.xlane.xlu0 %309  ;;  %v326_v42 = vpop.xlane.xlu1 %325 }
 0x216   :  { %792 = vlog2.f32 %v310_v54 }
 0x217   :  { %794 = vlog2.f32 %v308_v5 }
 0x218   :  { %796 = vlog2.f32 %v312_v62 }
 0x219   :  { %v320_v48 = vpop.xlane.xlu0 %319  ;;  %v322_v2 = vpop.xlane.xlu1 %321 }
 0x220   :  { %v793_v45 = vpop.eup %792  ;;  %v318_v24 = vpop.xlane.xlu1 %317 }
 0x221   :  { %v316_v53 = vpop.xlane.xlu0 %315  ;;  %v795_v6 = vpop.eup %794  ;;  %v342_v40 = vmul.f32 0.6931472, %v793_v45 }
 0x222   :  { %798 = vlog2.f32 %v316_v53  ;;  %v340_v25 = vmul.f32 0.6931472, %v795_v6  ;;  %v797_v46 = vpop.eup %796 }
 0x223   :  { %800 = vlog2.f32 %v314_v43  ;;  %v372_v55 = vadd.f32 %v342_v40, %v1106_v33  ;;  %v344_v32 = vmul.f32 0.6931472, %v797_v46 }
 0x224   :  { %802 = vlog2.f32 %v318_v24  ;;  %v371_v30 = vadd.f32 %v340_v25, %v1092_v13  ;;  %v330_v13 = vpop.xlane.xlu1 %329 }
 0x225   :  { %v476_v7 = vpop.xlane.xlu0 %475  ;;  %v502_v52 = vsub.f32 %v372_v55, %v472_v1  ;;  %804 = vlog2.f32 %v320_v48  ;;  %v373_v57 = vadd.f32 %v344_v32, %v1082_v3 }
 0x226   :  { %v501_v50 = vsub.f32 %v371_v30, %v470_v34  ;;  %806 = vlog2.f32 %v322_v2 }
 0x227   :  { %v534_v62 = vsel %vm518_vm12, %v502_v52, 0.0  ;;  %v503_v33 = vsub.f32 %v373_v57, %v474_v35  ;;  %808 = vlog2.f32 %v324_v49  ;;  %vm1323_vm12 = vcmp.ge.s32.totalorder %v921_v16, 0 }
 0x228   :  { %v533_v54 = vsel %vm517_vm13, %v501_v50, 0.0  ;;  %v551_v43 = vsel %vm549_vm15, %v534_v62, 0.0  ;;  %v332_v6 = vpop.xlane.xlu1 %331  ;;  %810 = vlog2.f32 %v328_v37 }
 0x229   :  { %v478_v29 = vpop.xlane.xlu0 %477  ;;  %v550_v48 = vsel %vm549_vm15, %v533_v54, 0.0  ;;  %v535_v9 = vsel %vm519_vm0, %v503_v33, 0.0  ;;  %812 = vlog2.f32 %v326_v42 }
 0x22a   :  { %v552_v35 = vadd.f32 %v551_v43, %v550_v48  ;;  %814 = vlog2.f32 %v332_v6 }
 0x22b   :  { %816 = vlog2.f32 %v330_v13 }
 0x22c   :  { %v799_v44 = vpop.eup %798  ;;  %v336_v30 = vpop.xlane.xlu1 %335 }
 0x22d   :  { %v801_v47 = vpop.eup %800  ;;  %v348_v41 = vmul.f32 0.6931472, %v799_v44  ;;  %v480_v56 = vpop.xlane.xlu0 %479  ;;  %818 = vlog2.f32 %v336_v30 }
 0x22e   :  { %v346_v36 = vmul.f32 0.6931472, %v801_v47  ;;  %v803_v5 = vpop.eup %802 }
 0x22f   :  { %v375_v1 = vadd.f32 %v348_v41, %v1126_v51  ;;  %v350_v3 = vmul.f32 0.6931472, %v803_v5  ;;  %v805_v10 = vpop.eup %804  ;;  %v553_v51 = vsel %vm549_vm15, %v535_v9, 0.0 }
 0x230   :  { %v374_v34 = vadd.f32 %v346_v36, %v1090_v12  ;;  %v807_v40 = vpop.eup %806  ;;  %v352_v24 = vmul.f32 0.6931472, %v805_v10  ;;  %v554_v25 = vadd.f32 %v553_v51, %v552_v35 }
 0x231   :  { %v482_v53 = vpop.xlane.xlu0 %481  ;;  %v505_v45 = vsub.f32 %v375_v1, %v478_v29  ;;  %v376_v49 = vadd.f32 %v350_v3, %v1124_v28  ;;  %v809_v46 = vpop.eup %808  ;;  %v354_v55 = vmul.f32 0.6931472, %v807_v40 }
 0x232   :  { %v504_v2 = vsub.f32 %v374_v34, %v476_v7  ;;  %v377_v15 = vadd.f32 %v352_v24, %v1114_v38  ;;  %v356_v44 = vmul.f32 0.6931472, %v809_v46  ;;  %v811_v41 = vpop.eup %810 }
 0x233   :  { %v537_v11 = vsel %vm521_vm2, %v505_v45, 0.0  ;;  %v506_v29 = vsub.f32 %v376_v49, %v480_v56  ;;  %v378_v47 = vadd.f32 %v354_v55, %v1112_v0  ;;  %v813_v5 = vpop.eup %812  ;;  %v360_v54 = vmul.f32 0.6931472, %v811_v41 }
 0x234   :  { %v536_v12 = vsel %vm520_vm1, %v504_v2, 0.0  ;;  %v557_v28 = vsel %vm549_vm15, %v537_v11, 0.0  ;;  %v507_v42 = vsub.f32 %v377_v15, %v482_v53  ;;  %v379_v38 = vadd.f32 %v356_v44, %v1100_v27  ;;  %v815_v0 = vpop.eup %814 }
 0x235   :  { %v484_v7 = vpop.xlane.xlu0 %483  ;;  %v555_v32 = vsel %vm549_vm15, %v536_v12, 0.0  ;;  %v538_v17 = vsel %vm522_vm4, %v506_v29, 0.0  ;;  %v817_v3 = vpop.eup %816  ;;  %v358_v34 = vmul.f32 0.6931472, %v813_v5  ;;  %v364_v9 = vmul.f32 0.6931472, %v815_v0 }
 0x236   :  { %v556_v37 = vadd.f32 %v555_v32, %v554_v25  ;;  %v508_v50 = vsub.f32 %v378_v47, %v484_v7  ;;  %v559_v56 = vsel %vm549_vm15, %v538_v17, 0.0  ;;  %v539_v62 = vsel %vm523_vm5, %v507_v42, 0.0 }
 0x237   :  { %v561_v1 = vsel %vm549_vm15, %v539_v62, 0.0  ;;  %v381_v2 = vadd.f32 %v360_v54, %v1084_v4  ;;  %v819_v20 = vpop.eup %818  ;;  %v362_v35 = vmul.f32 0.6931472, %v817_v3  ;;  %v380_v6 = vadd.f32 %v358_v34, %v1104_v31 }
 0x238   :  { %v558_v52 = vadd.f32 %v557_v28, %v556_v37  ;;  %v540_v18 = vsel %vm524_vm6, %v508_v50, 0.0  ;;  %v368_v24 = vmul.f32 0.6931472, %v819_v20  ;;  %v383_v12 = vadd.f32 %v364_v9, %v1134_v61 }
 0x239   :  { %v486_v57 = vpop.xlane.xlu0 %485  ;;  %v563_v19 = vsel %vm549_vm15, %v540_v18, 0.0  ;;  %v382_v21 = vadd.f32 %v362_v35, %v1098_v26 }
 0x23a   :  { %v560_v36 = vadd.f32 %v559_v56, %v558_v52  ;;  %v509_v13 = vsub.f32 %v379_v38, %v486_v57  ;;  %v385_v37 = vadd.f32 %v368_v24, %v1122_v23 }
 0x23c   :  { %v562_v48 = vadd.f32 %v561_v1, %v560_v36  ;;  %v541_v27 = vsel %vm525_vm7, %v509_v13, 0.0 }
 0x23d   :  { %v490_v43 = vpop.xlane.xlu0 %489  ;;  %v565_v49 = vsel %vm549_vm15, %v541_v27, 0.0 }
 0x23e   :  { %v564_v45 = vadd.f32 %v563_v19, %v562_v48  ;;  %v511_v10 = vsub.f32 %v381_v2, %v490_v43 }
 0x240   :  { %v566_v7 = vadd.f32 %v565_v49, %v564_v45  ;;  %v543_v4 = vsel %vm527_vm10, %v511_v10, 0.0 }
 0x241   :  { %v494_v40 = vpop.xlane.xlu0 %493  ;;  %v569_v26 = vsel %vm549_vm15, %v543_v4, 0.0 }
 0x242   :  { %v513_v46 = vsub.f32 %v383_v12, %v494_v40 }
 0x244   :  { %v545_v22 = vsel %vm529_vm9, %v513_v46, 0.0 }
 0x245   :  { %v573_v41 = vsel %vm549_vm15, %v545_v22, 0.0 }
 0x24c   :  { %v498_v31 = vpop.xlane.xlu0 %497 }
 0x24d   :  { %v515_v52 = vsub.f32 %v385_v37, %v498_v31 }
 0x255   :  { %v334_v33 = vpop.xlane.xlu1 %333 }
 0x256   :  { %820 = vlog2.f32 %v334_v33 }
 0x259   :  { %v338_v53 = vpop.xlane.xlu1 %337 }
 0x25a   :  { %822 = vlog2.f32 %v338_v53 }
 0x25d   :  { %v488_v51 = vpop.xlane.xlu1 %487 }
 0x25e   :  { %v510_v25 = vsub.f32 %v380_v6, %v488_v51 }
 0x260   :  { %v821_v11 = vpop.eup %820  ;;  %v542_v55 = vsel %vm526_vm8, %v510_v25, 0.0 }
 0x261   :  { %v366_v29 = vmul.f32 0.6931472, %v821_v11  ;;  %v567_v32 = vsel %vm549_vm15, %v542_v55, 0.0  ;;  %v492_v28 = vpop.xlane.xlu1 %491 }
 0x262   :  { %v568_v61 = vadd.f32 %v567_v32, %v566_v7  ;;  %v512_v30 = vsub.f32 %v382_v21, %v492_v28 }
 0x263   :  { %v384_v15 = vadd.f32 %v366_v29, %v1170_v39  ;;  %v547_v39 = vsel %vm531_vm14, %v515_v52, 0.0 }
 0x264   :  { %v823_v44 = vpop.eup %822  ;;  %v544_v14 = vsel %vm1323_vm12, %v512_v30, 0.0  ;;  %v570_v17 = vadd.f32 %v569_v26, %v568_v61  ;;  %v577_v33 = vsel %vm549_vm15, %v547_v39, 0.0 }
 0x265   :  { %v370_v42 = vmul.f32 0.6931472, %v823_v44  ;;  %v571_v47 = vsel %vm549_vm15, %v544_v14, 0.0  ;;  %v496_v57 = vpop.xlane.xlu1 %495 }
 0x266   :  { %v572_v23 = vadd.f32 %v571_v47, %v570_v17  ;;  %v514_v50 = vsub.f32 %v384_v15, %v496_v57 }
 0x267   :  { %v386_v56 = vadd.f32 %v370_v42, %v1120_v8 }
 0x268   :  { %v546_v58 = vsel %vm530_vm11, %v514_v50, 0.0  ;;  %v574_v36 = vadd.f32 %v573_v41, %v572_v23 }
 0x269   :  { %v575_v16 = vsel %vm549_vm15, %v546_v58, 0.0  ;;  %v500_v62 = vpop.xlane.xlu1 %499 }
 0x26a   :  { %v576_v38 = vadd.f32 %v575_v16, %v574_v36  ;;  %v516_v5 = vsub.f32 %v386_v56, %v500_v62 }
 0x26c   :  { %v548_v54 = vsel %vm532_vm3, %v516_v5, 0.0  ;;  %v578_v18 = vadd.f32 %v577_v33, %v576_v38 }
 0x26d   :  { %v579_v8 = vsel %vm549_vm15, %v548_v54, 0.0  ;;  %v654_v63 = vpop.xlane.xlu1 %653 }
 0x26e   :  { %v580_v13 = vadd.f32 %v579_v8, %v578_v18  ;;  %v655_v0 = vrot.slane %v654_v63, 4 }
 0x270   :  { %581 = vadd.xlane.f32.xlu0 %v580_v13  ;;  %v656_v59 = vadd.f32 %v655_v0, %v654_v63 }
 0x272   :  { %v657_v1 = vrot.slane %v656_v59, 2 }
 0x274   :  { %v658_v48 = vadd.f32 %v657_v1, %v656_v59 }
 0x276   :  { %v659_v9 = vrot.slane %v658_v48, 1 }
 0x278   :  { %v660_v60 = vadd.f32 %v659_v9, %v658_v48 }
 0x2fd   :  { %v582_v43 = vpop.xlane.xlu0 %581 }
 0x2fe   :  { %v583_v3 = vrot.slane %v582_v43, 4 }
 0x300   :  { %v584_v34 = vadd.f32 %v583_v3, %v582_v43 }
 0x302   :  { %v585_v19 = vrot.slane %v584_v34, 2 }
 0x304   :  { %v586_v53 = vadd.f32 %v585_v19, %v584_v34 }
 0x306   :  { %v587_v27 = vrot.slane %v586_v53, 1 }
 0x308   :  { %v588_v2 = vadd.f32 %v587_v27, %v586_v53 }
 0x30a   :  { %742 = vpush %v588_v2 }
 0x30b   :  { %744 = vpush %v660_v60 }
 0x33b   :  { %s743_s0 = spop %742 }
 0x33c   :  { %v662_v20 = vstv %s743_s0  ;;  %s745_s12 = spop %744 }
 0x33d   :  { %663 = vst [vmem:[%s1320_s3] sm:$0xff] %v662_v20  ;;  %v664_v35 = vstv %s745_s12 }
 0x33e   :  { %665 = vst [vmem:[%s1321_s4] sm:$0xff] %v664_v35 }

</bundles_post_ra>
